<compile_context>
chip_gen: v6e
topology: v6e:2x2x1
jax: 0.10.0
libtpu: 0.0.40
codegen_flags: <defaults>
</compile_context>

<pallas_src>
import functools

import jax
import jax.numpy as jnp
import numpy as np
from jax.experimental import pallas as pl
from jax.experimental.pallas import tpu as pltpu


# ---------------------------------------------------------------------------
# Kernel
# ---------------------------------------------------------------------------
def basic_block_kernel(x_ref, w1_ref, b1_ref, w2_ref, b2_ref, out_ref, *, img_h):
    # x_ref  : (B*H, W*C) f32   B images, rows flattened, width*channels on lanes
    # w*_ref : (W*C, 3*W*C) bf16 banded 3x3 conv weights with the BN scale folded
    #                           in; the three W*C-wide column blocks are the
    #                           kh = 0, 1, 2 vertical taps
    # b*_ref : (1, W*C) f32     folded BatchNorm bias (tiled over W)
    # out_ref: (B*H, W*C) f32
    x = x_ref[...]                                     # (BH, WC) f32
    BH, WC = x.shape

    # Per-image border masks along H (the conv's zero padding): rows that have a
    # valid neighbour above / below inside the same image.  Cheap VPU work,
    # recomputed per step but tiny (no (H,H) matrices, no small-lane operands).
    row = jax.lax.broadcasted_iota(jnp.int32, (BH, WC), 0)
    has_above = (row % img_h) != 0
    has_below = (row % img_h) != (img_h - 1)

    def conv3x3(a, w_ref):
        # One bf16 MXU matmul -> the three vertical-tap partial sums side by
        # side (f32 accumulation), then align them to the output rows with two
        # exact XLU sublane rolls + border masks.  No shift matmuls, no masksed
        # stores, no relayouts.
        b = jnp.dot(a.astype(jnp.bfloat16), w_ref[...],
                    preferred_element_type=jnp.float32)          # (BH, 3*WC) f32
        top = pltpu.roll(b[:, :WC], shift=1, axis=0)             # row h <- h-1
        bot = pltpu.roll(b[:, 2 * WC:], shift=BH - 1, axis=0)    # row h <- h+1
        return (jnp.where(has_above, top, 0.0)
                + b[:, WC:2 * WC]
                + jnp.where(has_below, bot, 0.0))

    y = jnp.maximum(conv3x3(x, w1_ref) + b1_ref[0], 0.0)         # conv1+bn1+relu
    z = conv3x3(y, w2_ref) + b2_ref[0]                           # conv2+bn2
    out_ref[...] = jnp.maximum(z + x, 0.0).astype(out_ref.dtype) # +residual, relu


# ---------------------------------------------------------------------------
# Host-side parameter packing
# ---------------------------------------------------------------------------
def _fold_bn(gamma, beta, mean, var, eps):
    scale = gamma * jax.lax.rsqrt(var + eps)
    return scale, beta - mean * scale


def _banded_conv_weight(w_oihw, width, out_scale=None):
    """PyTorch (Cout, Cin, 3, 3) conv weight -> (W*Cin, 3*W*Cout) banded matrix.

    out[wi*Cin + ci, (kh*W + wo)*Cout + co] = w[co, ci, kh, wi - wo + 1]
    for |wi - wo| <= 1, else 0: the kw taps of the 3x3 conv written as a
    block-tridiagonal operator acting on one fused (W*Cin) image row.
    If out_scale is given (per-Cout BN scale) it is folded into the weights.
    """
    w_hwio = jnp.transpose(w_oihw, (2, 3, 1, 0))             # (3, 3, Cin, Cout)
    if out_scale is not None:
        w_hwio = w_hwio * out_scale                          # fold BN scale (Cout)
    kh_, kw_, cin, cout = w_hwio.shape
    wi = jnp.arange(width)[:, None]
    wo = jnp.arange(width)[None, :]
    kw = wi - wo + 1                                         # (W, W)
    valid = (kw >= 0) & (kw < kw_)
    g = w_hwio[:, jnp.clip(kw, 0, kw_ - 1)]                  # (kh, wi, wo, ci, co)
    g = jnp.where(valid[None, :, :, None, None], g, 0.0)
    g = jnp.transpose(g, (1, 3, 0, 2, 4))                    # (wi, ci, kh, wo, co)
    return g.reshape(width * cin, kh_ * width * cout)


def pack_basic_block_params(conv1_w, bn1, conv2_w, bn2, width, eps=1e-5):
    """Pack weights once (banded + BN-scale folded, bf16) for reuse across calls."""
    cin = conv1_w.shape[1]
    wc = width * cin
    s1, b1 = _fold_bn(*bn1, eps)
    s2, b2 = _fold_bn(*bn2, eps)
    w1b = _banded_conv_weight(conv1_w, width, out_scale=s1).astype(jnp.bfloat16)
    w2b = _banded_conv_weight(conv2_w, width, out_scale=s2).astype(jnp.bfloat16)
    b1t = jnp.tile(b1, width).reshape(1, wc)
    b2t = jnp.tile(b2, width).reshape(1, wc)
    return w1b, b1t, w2b, b2t


def _choose_images_per_step(n, h, target_rows=256):
    """Largest divisor B of n with B*h ~ target_rows, keeping >=2 grid steps
    when n allows (v7x megacore)."""
    want = max(1, -(-target_rows // h))                      # ceil(target/h)
    divs = [d for d in range(1, n + 1) if n % d == 0]
    cands = [d for d in divs if d <= want and n // d >= 2]
    if not cands:
        cands = [d for d in divs if d <= want] or [1]
    return max(cands)


# ---------------------------------------------------------------------------
# Pallas wrappers
# ---------------------------------------------------------------------------
def basic_block_fused(x_rows, w1b, b1t, w2b, b2t, *, img_h, images_per_step=None):
    """BasicBlock on fused activations: x_rows is (N*H, W*C), returned likewise.
    Use this entry point to chain many blocks without NCHW layout plumbing."""
    NH, WC = x_rows.shape
    assert WC % 128 == 0, "fused W*C must be a multiple of the 128-lane width"
    assert NH % img_h == 0
    n_img = NH // img_h
    B = images_per_step or _choose_images_per_step(n_img, img_h)
    assert n_img % B == 0
    BH = B * img_h

    kernel = functools.partial(basic_block_kernel, img_h=img_h)
    return pl.pallas_call(
        kernel,
        out_shape=jax.ShapeDtypeStruct((NH, WC), x_rows.dtype),
        grid=(n_img // B,),
        in_specs=[
            pl.BlockSpec((BH, WC), lambda n: (n, 0)),
            pl.BlockSpec(w1b.shape, lambda n: (0, 0)),
            pl.BlockSpec(b1t.shape, lambda n: (0, 0)),
            pl.BlockSpec(w2b.shape, lambda n: (0, 0)),
            pl.BlockSpec(b2t.shape, lambda n: (0, 0)),
        ],
        out_specs=pl.BlockSpec((BH, WC), lambda n: (n, 0)),
        compiler_params=pltpu.CompilerParams(
            dimension_semantics=("parallel",)),
    )(x_rows, w1b, b1t, w2b, b2t)


@jax.jit
def basic_block(x, conv1_w, bn1, conv2_w, bn2, eps=1e-5):
    """Eval-mode ResNet BasicBlock forward (NCHW in / NCHW out).

    x: (N, C, H, W) NCHW (PyTorch layout); conv*_w: (C, C, 3, 3) OIHW;
    bn* = (gamma, beta, running_mean, running_var), each (C,).
    """
    N, C, H, W = x.shape
    WC = W * C
    assert WC % 128 == 0, "fused W*C must be a multiple of the 128-lane width"
    assert conv1_w.shape == (C, C, 3, 3) and conv2_w.shape == (C, C, 3, 3)

    params = pack_basic_block_params(conv1_w, bn1, conv2_w, bn2, W, eps)

    # NCHW -> lane-dense flat rows (N*H, W*C); layout plumbing outside the kernel.
    x_rows = jnp.transpose(x, (0, 2, 3, 1)).reshape(N * H, WC)
    out_rows = basic_block_fused(x_rows, *params, img_h=H)
    return jnp.transpose(out_rows.reshape(N, H, W, C), (0, 3, 1, 2))   # back to NCHW


# ---------------------------------------------------------------------------
# References
# ---------------------------------------------------------------------------
def ref_basic_block_f32(x, w1, bn1, w2, bn2, eps):
    """Pure-JAX f32 reference == PyTorch eval-mode BasicBlock (NCHW / OIHW)."""
    def conv(inp, w):
        return jax.lax.conv_general_dilated(
            inp, w, window_strides=(1, 1), padding=((1, 1), (1, 1)),
            dimension_numbers=("NCHW", "OIHW", "NCHW"))
    def bn(t, p):
        g, b, m, v = (a.reshape(1, -1, 1, 1) for a in p)
        return (t - m) * jax.lax.rsqrt(v + eps) * g + b
    y = jnp.maximum(bn(conv(x, w1), bn1), 0.0)
    z = bn(conv(y, w2), bn2)
    return jnp.maximum(z + x, 0.0)


def ref_basic_block_kernel_math(x, w1, bn1, w2, bn2, eps):
    """Same module math with the kernel's exact mixed precision: BN scale folded
    into the conv weight before the bf16 cast, bf16 conv operands, f32 accum."""
    s1, b1 = _fold_bn(*bn1, eps)
    s2, b2 = _fold_bn(*bn2, eps)
    def conv(inp, w, s):
        ws = (w * s[:, None, None, None]).astype(jnp.bfloat16)   # per-Cout scale
        return jax.lax.conv_general_dilated(
            inp.astype(jnp.bfloat16), ws,
            window_strides=(1, 1), padding=((1, 1), (1, 1)),
            dimension_numbers=("NCHW", "OIHW", "NCHW"),
            preferred_element_type=jnp.float32)
    y = jnp.maximum(conv(x, w1, s1) + b1.reshape(1, -1, 1, 1), 0.0)
    z = conv(y, w2, s2) + b2.reshape(1, -1, 1, 1)
    return jnp.maximum(z + x, 0.0)


# ---------------------------------------------------------------------------
# Demo / correctness check
# ---------------------------------------------------------------------------
if __name__ == "__main__":
    # BasicBlock(inplanes=planes=8), stride=1, downsample=None;  W * C = 128.
    N, C, H, W = 2, 8, 16, 16
    eps = 1e-5

    key = jax.random.PRNGKey(0)
    ks = jax.random.split(key, 11)

    x = jax.random.normal(ks[0], (N, C, H, W), jnp.float32)
    w1 = jax.random.normal(ks[1], (C, C, 3, 3), jnp.float32) * 0.1   # OIHW
    w2 = jax.random.normal(ks[2], (C, C, 3, 3), jnp.float32) * 0.1

    bn1 = (jax.random.uniform(ks[3], (C,), jnp.float32, 0.5, 1.5),   # gamma
           jax.random.normal(ks[4], (C,), jnp.float32) * 0.1,        # beta
           jax.random.normal(ks[5], (C,), jnp.float32) * 0.1,        # running mean
           jax.random.uniform(ks[6], (C,), jnp.float32, 0.5, 1.5))   # running var
    bn2 = (jax.random.uniform(ks[7], (C,), jnp.float32, 0.5, 1.5),
           jax.random.normal(ks[8], (C,), jnp.float32) * 0.1,
           jax.random.normal(ks[9], (C,), jnp.float32) * 0.1,
           jax.random.uniform(ks[10], (C,), jnp.float32, 0.5, 1.5))

    out = jax.block_until_ready(basic_block(x, w1, bn1, w2, bn2, eps))

    # (1) Kernel-math check against a reference with the same mixed precision
    #     (BN scale folded into bf16 weights, bf16 MXU operands, f32 accum).
    ref_mixed = jax.block_until_ready(
        ref_basic_block_kernel_math(x, w1, bn1, w2, bn2, eps))
    np.testing.assert_allclose(np.asarray(out), np.asarray(ref_mixed),
                               rtol=2e-2, atol=2e-2)

    # (2) Module-fidelity check against the full-f32 PyTorch-equivalent reference;
    #     tolerance reflects the intentional bf16 matmul operands.
    ref_f32 = jax.block_until_ready(ref_basic_block_f32(x, w1, bn1, w2, bn2, eps))
    np.testing.assert_allclose(np.asarray(out), np.asarray(ref_f32),
                               rtol=5e-2, atol=5e-2)

    print("KERNEL_OK")
</pallas_src>

<mosaic_0001>
module attributes {stable_mosaic.version = 11 : i64} {
  func.func @basic_block_kernel(%arg0: i32, %arg1: memref<16x128xf32, #tpu.memory_space<vmem>>, %arg2: memref<128x384xbf16, #tpu.memory_space<vmem>>, %arg3: memref<1x128xf32, #tpu.memory_space<vmem>>, %arg4: memref<128x384xbf16, #tpu.memory_space<vmem>>, %arg5: memref<1x128xf32, #tpu.memory_space<vmem>>, %arg6: memref<16x128xf32, #tpu.memory_space<vmem>>) attributes {dimension_semantics = [#tpu.dimension_semantics<parallel>], iteration_bounds = array<i64: 2>, scalar_prefetch = 0 : i64, scratch_operands = 0 : i64, tpu.core_type = #tpu.core_type<tc>, window_params = [{transform_indices = @transform_0, window_bounds = array<i64: 16, 128>}, {pipeline_mode = #tpu.pipeline_mode<synchronous>, transform_indices = @transform_1, window_bounds = array<i64: 128, 384>}, {pipeline_mode = #tpu.pipeline_mode<synchronous>, transform_indices = @transform_2, window_bounds = array<i64: 1, 128>}, {pipeline_mode = #tpu.pipeline_mode<synchronous>, transform_indices = @transform_3, window_bounds = array<i64: 128, 384>}, {pipeline_mode = #tpu.pipeline_mode<synchronous>, transform_indices = @transform_4, window_bounds = array<i64: 1, 128>}, {transform_indices = @transform_5, window_bounds = array<i64: 16, 128>}]} {
    %c0 = arith.constant 0 : index
    %c0_0 = arith.constant 0 : index
    %0 = vector.load %arg1[%c0, %c0_0] : memref<16x128xf32, #tpu.memory_space<vmem>>, vector<16x128xf32>
    %1 = tpu.iota {dimensions = array<i32: 0>} : vector<16x128xi32>
    %c16_i32 = arith.constant 16 : i32
    %c0_i32 = arith.constant 0 : i32
    %2 = arith.cmpi eq, %c16_i32, %c0_i32 : i32
    %c1_i32 = arith.constant 1 : i32
    %3 = arith.select %2, %c1_i32, %c16_i32 : i32
    %4 = vector.broadcast %3 : i32 to vector<16x128xi32>
    %5 = arith.remsi %1, %4 : vector<16x128xi32>
    %c0_i32_1 = arith.constant 0 : i32
    %6 = vector.broadcast %c0_i32_1 : i32 to vector<16x128xi32>
    %7 = arith.cmpi ne, %5, %6 : vector<16x128xi32>
    %c0_i32_2 = arith.constant 0 : i32
    %8 = vector.broadcast %c0_i32_2 : i32 to vector<16x128xi32>
    %9 = arith.cmpi slt, %5, %8 : vector<16x128xi32>
    %c0_i32_3 = arith.constant 0 : i32
    %10 = arith.cmpi slt, %3, %c0_i32_3 : i32
    %11 = vector.broadcast %10 : i1 to vector<16x128xi1>
    %12 = vector.broadcast %11 : vector<16x128xi1> to vector<16x128xi1>
    %13 = arith.xori %9, %12 : vector<16x128xi1>
    %14 = arith.andi %13, %7 : vector<16x128xi1>
    %15 = vector.broadcast %3 : i32 to vector<16x128xi32>
    %16 = arith.addi %5, %15 : vector<16x128xi32>
    %17 = arith.select %14, %16, %5 : vector<16x128xi1>, vector<16x128xi32>
    %c0_i32_4 = arith.constant 0 : i32
    %18 = vector.broadcast %c0_i32_4 : i32 to vector<16x128xi32>
    %19 = arith.cmpi ne, %17, %18 : vector<16x128xi32>
    %c16_i32_5 = arith.constant 16 : i32
    %c0_i32_6 = arith.constant 0 : i32
    %20 = arith.cmpi eq, %c16_i32_5, %c0_i32_6 : i32
    %c1_i32_7 = arith.constant 1 : i32
    %21 = arith.select %20, %c1_i32_7, %c16_i32_5 : i32
    %22 = vector.broadcast %21 : i32 to vector<16x128xi32>
    %23 = arith.remsi %1, %22 : vector<16x128xi32>
    %c0_i32_8 = arith.constant 0 : i32
    %24 = vector.broadcast %c0_i32_8 : i32 to vector<16x128xi32>
    %25 = arith.cmpi ne, %23, %24 : vector<16x128xi32>
    %c0_i32_9 = arith.constant 0 : i32
    %26 = vector.broadcast %c0_i32_9 : i32 to vector<16x128xi32>
    %27 = arith.cmpi slt, %23, %26 : vector<16x128xi32>
    %c0_i32_10 = arith.constant 0 : i32
    %28 = arith.cmpi slt, %21, %c0_i32_10 : i32
    %29 = vector.broadcast %28 : i1 to vector<16x128xi1>
    %30 = vector.broadcast %29 : vector<16x128xi1> to vector<16x128xi1>
    %31 = arith.xori %27, %30 : vector<16x128xi1>
    %32 = arith.andi %31, %25 : vector<16x128xi1>
    %33 = vector.broadcast %21 : i32 to vector<16x128xi32>
    %34 = arith.addi %23, %33 : vector<16x128xi32>
    %35 = arith.select %32, %34, %23 : vector<16x128xi1>, vector<16x128xi32>
    %c15_i32 = arith.constant 15 : i32
    %36 = vector.broadcast %c15_i32 : i32 to vector<16x128xi32>
    %37 = arith.cmpi ne, %35, %36 : vector<16x128xi32>
    %38 = arith.truncf %0 : vector<16x128xf32> to vector<16x128xbf16>
    %c0_11 = arith.constant 0 : index
    %c0_12 = arith.constant 0 : index
    %39 = vector.load %arg2[%c0_11, %c0_12] : memref<128x384xbf16, #tpu.memory_space<vmem>>, vector<128x384xbf16>
    %cst = arith.constant dense<0.000000e+00> : vector<16x384xf32>
    %40 = tpu.matmul %38, %39, %cst {dimension_numbers = #tpu.dot_dimension_numbers<[1], [0], [0], [1], [0, 0, 1, 1], [], []>} : vector<16x128xbf16>, vector<128x384xbf16>, vector<16x384xf32> -> vector<16x384xf32>
    %41 = vector.extract_strided_slice %40 {offsets = [0, 0], sizes = [16, 128], strides = [1, 1]} : vector<16x384xf32> to vector<16x128xf32>
    %c1_i32_13 = arith.constant 1 : i32
    %42 = tpu.dynamic_rotate %41 by %c1_i32_13 dim 0 : vector<16x128xf32>, i32 -> vector<16x128xf32>
    %43 = vector.extract_strided_slice %40 {offsets = [0, 256], sizes = [16, 128], strides = [1, 1]} : vector<16x384xf32> to vector<16x128xf32>
    %c15_i32_14 = arith.constant 15 : i32
    %44 = tpu.dynamic_rotate %43 by %c15_i32_14 dim 0 : vector<16x128xf32>, i32 -> vector<16x128xf32>
    %cst_15 = arith.constant 0.000000e+00 : f32
    %45 = vector.broadcast %cst_15 : f32 to vector<16x128xf32>
    %46 = arith.select %19, %42, %45 : vector<16x128xi1>, vector<16x128xf32>
    %47 = vector.extract_strided_slice %40 {offsets = [0, 128], sizes = [16, 128], strides = [1, 1]} : vector<16x384xf32> to vector<16x128xf32>
    %48 = arith.addf %46, %47 : vector<16x128xf32>
    %cst_16 = arith.constant 0.000000e+00 : f32
    %49 = vector.broadcast %cst_16 : f32 to vector<16x128xf32>
    %50 = arith.select %37, %44, %49 : vector<16x128xi1>, vector<16x128xf32>
    %51 = arith.addf %48, %50 : vector<16x128xf32>
    %c0_17 = arith.constant 0 : index
    %c0_18 = arith.constant 0 : index
    %52 = vector.load %arg3[%c0_17, %c0_18] : memref<1x128xf32, #tpu.memory_space<vmem>>, vector<1x128xf32>
    %53 = vector.shape_cast %52 : vector<1x128xf32> to vector<128xf32>
    %54 = vector.shape_cast %53 : vector<128xf32> to vector<1x128xf32>
    %55 = vector.broadcast %54 : vector<1x128xf32> to vector<16x128xf32>
    %56 = arith.addf %51, %55 : vector<16x128xf32>
    %cst_19 = arith.constant 0.000000e+00 : f32
    %57 = vector.broadcast %cst_19 : f32 to vector<16x128xf32>
    %58 = arith.maximumf %56, %57 : vector<16x128xf32>
    %59 = arith.truncf %58 : vector<16x128xf32> to vector<16x128xbf16>
    %c0_20 = arith.constant 0 : index
    %c0_21 = arith.constant 0 : index
    %60 = vector.load %arg4[%c0_20, %c0_21] : memref<128x384xbf16, #tpu.memory_space<vmem>>, vector<128x384xbf16>
    %cst_22 = arith.constant dense<0.000000e+00> : vector<16x384xf32>
    %61 = tpu.matmul %59, %60, %cst_22 {dimension_numbers = #tpu.dot_dimension_numbers<[1], [0], [0], [1], [0, 0, 1, 1], [], []>} : vector<16x128xbf16>, vector<128x384xbf16>, vector<16x384xf32> -> vector<16x384xf32>
    %62 = vector.extract_strided_slice %61 {offsets = [0, 0], sizes = [16, 128], strides = [1, 1]} : vector<16x384xf32> to vector<16x128xf32>
    %c1_i32_23 = arith.constant 1 : i32
    %63 = tpu.dynamic_rotate %62 by %c1_i32_23 dim 0 : vector<16x128xf32>, i32 -> vector<16x128xf32>
    %64 = vector.extract_strided_slice %61 {offsets = [0, 256], sizes = [16, 128], strides = [1, 1]} : vector<16x384xf32> to vector<16x128xf32>
    %c15_i32_24 = arith.constant 15 : i32
    %65 = tpu.dynamic_rotate %64 by %c15_i32_24 dim 0 : vector<16x128xf32>, i32 -> vector<16x128xf32>
    %cst_25 = arith.constant 0.000000e+00 : f32
    %66 = vector.broadcast %cst_25 : f32 to vector<16x128xf32>
    %67 = arith.select %19, %63, %66 : vector<16x128xi1>, vector<16x128xf32>
    %68 = vector.extract_strided_slice %61 {offsets = [0, 128], sizes = [16, 128], strides = [1, 1]} : vector<16x384xf32> to vector<16x128xf32>
    %69 = arith.addf %67, %68 : vector<16x128xf32>
    %cst_26 = arith.constant 0.000000e+00 : f32
    %70 = vector.broadcast %cst_26 : f32 to vector<16x128xf32>
    %71 = arith.select %37, %65, %70 : vector<16x128xi1>, vector<16x128xf32>
    %72 = arith.addf %69, %71 : vector<16x128xf32>
    %c0_27 = arith.constant 0 : index
    %c0_28 = arith.constant 0 : index
    %73 = vector.load %arg5[%c0_27, %c0_28] : memref<1x128xf32, #tpu.memory_space<vmem>>, vector<1x128xf32>
    %74 = vector.shape_cast %73 : vector<1x128xf32> to vector<128xf32>
    %75 = vector.shape_cast %74 : vector<128xf32> to vector<1x128xf32>
    %76 = vector.broadcast %75 : vector<1x128xf32> to vector<16x128xf32>
    %77 = arith.addf %72, %76 : vector<16x128xf32>
    %78 = arith.addf %77, %0 : vector<16x128xf32>
    %cst_29 = arith.constant 0.000000e+00 : f32
    %79 = vector.broadcast %cst_29 : f32 to vector<16x128xf32>
    %80 = arith.maximumf %78, %79 : vector<16x128xf32>
    %c0_30 = arith.constant 0 : index
    %c0_31 = arith.constant 0 : index
    %81 = vector.load %arg6[%c0_30, %c0_31] : memref<16x128xf32, #tpu.memory_space<vmem>>, vector<16x128xf32>
    tpu.vector_store %arg6[%c0_30, %c0_31], %80 {strides = array<i32>} : memref<16x128xf32, #tpu.memory_space<vmem>>, vector<16x128xf32>,
    return
  }
  func.func @transform_0(%arg0: i32) -> (i32, i32) {
    %c0_i32 = arith.constant 0 : i32
    %c0_i32_0 = arith.constant 0 : i32
    return %arg0, %c0_i32 : i32, i32
  }
  func.func @transform_1(%arg0: i32) -> (i32, i32) {
    %c0_i32 = arith.constant 0 : i32
    %c0_i32_0 = arith.constant 0 : i32
    %c0_i32_1 = arith.constant 0 : i32
    return %c0_i32, %c0_i32_0 : i32, i32
  }
  func.func @transform_2(%arg0: i32) -> (i32, i32) {
    %c0_i32 = arith.constant 0 : i32
    %c0_i32_0 = arith.constant 0 : i32
    %c0_i32_1 = arith.constant 0 : i32
    return %c0_i32, %c0_i32_0 : i32, i32
  }
  func.func @transform_3(%arg0: i32) -> (i32, i32) {
    %c0_i32 = arith.constant 0 : i32
    %c0_i32_0 = arith.constant 0 : i32
    %c0_i32_1 = arith.constant 0 : i32
    return %c0_i32, %c0_i32_0 : i32, i32
  }
  func.func @transform_4(%arg0: i32) -> (i32, i32) {
    %c0_i32 = arith.constant 0 : i32
    %c0_i32_0 = arith.constant 0 : i32
    %c0_i32_1 = arith.constant 0 : i32
    return %c0_i32, %c0_i32_0 : i32, i32
  }
  func.func @transform_5(%arg0: i32) -> (i32, i32) {
    %c0_i32 = arith.constant 0 : i32
    %c0_i32_0 = arith.constant 0 : i32
    return %arg0, %c0_i32 : i32, i32
  }
}

</mosaic_0001>

<bundles_post_ra>
// kernel: tile.13
= control target key start
LH: loop header
LB: loop body
LE: loop exit
PB: predicated region body
PF: predicated region fallthrough
CT: control target
= control target key end

     0   :  { %s28_s0 = inlined_call_operand.vmem [shape: f32[8], index: 0, kind: input, shape index: {}]   ;;  %s29_s1 = inlined_call_operand.vmem [shape: f32[16,8], index: 1, kind: output, shape index: {}]  }
   0x1   :  { %v4_v0 = vld [vmem:[%s28_s0] ss:$0 sm:$0xff] }
   0x2   :  { %5 = vst [vmem:[%s29_s1] sm:$0xff] %v4_v0  ;;  %8 = vst [vmem:[%s29_s1 + $0x8] sm:$0xff] %v4_v0 }

// kernel: tile.14
= control target key start
LH: loop header
LB: loop body
LE: loop exit
PB: predicated region body
PF: predicated region fallthrough
CT: control target
= control target key end

     0   :  { %s133_s10 = smov 120   ;;  %s134_s11 = smov 104   ;;  %vm3_vm0 = vcmask 64512   ;;  %vm9_vm1 = vcmask 1048512   ;;  %vm15_vm2 = vcmask 982912   ;;  %vm21_vm3 = vcmask 917312   ;;  %s209_s0 = inlined_call_operand.vmem [shape: f32[16,8], index: 0, kind: input, shape index: {}]   ;;  %s210_s1 = inlined_call_operand.vmem [shape: f32[1,128], index: 1, kind: output, shape index: {}]  }
   0x1   :  { %v103_v0 = vld [vmem:[%s209_s0 + $0xf] sm:$0x1]   ;;  %v105_v1 = vld [vmem:[%s209_s0 + $0xd] sm:$0x1]   ;;  %v104_v2 = vld [vmem:[%s209_s0 + $0xe] sm:$0x1]  }
   0x2   :  { %7 = vrot.lane.b32.xlu0 %v103_v0, %s133_s10  ;;  %19 = vrot.lane.b32.xlu1 %v105_v1, %s134_s11  ;;  %v106_v3 = vld [vmem:[%s209_s0 + $0xc] sm:$0x1]   ;;  %s135_s16 = smov 112   ;;  %s136_s17 = smov 96   ;;  %v107_v4 = vld [vmem:[%s209_s0 + $0xb] sm:$0x1]  }
   0x3   :  { %v108_v5 = vld [vmem:[%s209_s0 + $0xa] sm:$0x1]   ;;  %v2_v6 = vld [vmem:[%s209_s0] sm:$0x1]   ;;  %s137_s24 = smov 88   ;;  %s138_s25 = smov 80  }
   0x4   :  { %4 = vst.msk [vmem:[#allocation0] sm:$0x1] %vm3_vm0, %v2_v6   ;;  %v109_v7 = vld [vmem:[%s209_s0 + $0x9] sm:$0x1]   ;;  %v110_v8 = vld [vmem:[%s209_s0 + $0x8] sm:$0x1]  }
   0x5   :  { %s139_s30 = smov 72   ;;  %s140_s2 = smov 64   ;;  %v111_v9 = vld [vmem:[%s209_s0 + $0x7] sm:$0x1]   ;;  %v112_v10 = vld [vmem:[%s209_s0 + $0x6] sm:$0x1]  }
   0x6   :  { %13 = vrot.lane.b32.xlu0 %v104_v2, %s135_s16  ;;  %25 = vrot.lane.b32.xlu1 %v106_v3, %s136_s17  ;;  %s141_s7 = smov 56   ;;  %s142_s8 = smov 48   ;;  %v113_v11 = vld [vmem:[%s209_s0 + $0x5] sm:$0x1]   ;;  %v114_v12 = vld [vmem:[%s209_s0 + $0x4] sm:$0x1]  }
   0x7   :  { %s143_s13 = smov 40   ;;  %s144_s14 = smov 32   ;;  %v115_v13 = vld [vmem:[%s209_s0 + $0x3] sm:$0x1]   ;;  %v116_v14 = vld [vmem:[%s209_s0 + $0x2] sm:$0x1]  }
   0x8   :  { %s145_s19 = smov 24   ;;  %s146_s20 = smov 16   ;;  %v117_v15 = vld [vmem:[%s209_s0 + $0x1] sm:$0x1]   ;;  %vm27_vm4 = vcmask 851712   ;;  %vm33_vm5 = vcmask 786112  }
   0x9   :  { %s147_s0 = smov 8   ;;  %vm39_vm6 = vcmask 720512   ;;  %vm45_vm7 = vcmask 654912   ;;  %vm51_vm8 = vcmask 589312   ;;  %vm57_vm9 = vcmask 523712  }
   0xa   :  { %31 = vrot.lane.b32.xlu0 %v107_v4, %s137_s24  ;;  %37 = vrot.lane.b32.xlu1 %v108_v5, %s138_s25  ;;  %vm63_vm10 = vcmask 458112   ;;  %vm69_vm11 = vcmask 392512   ;;  %vm75_vm12 = vcmask 326912   ;;  %vm81_vm13 = vcmask 261312  }
   0xb   :  { %vm87_vm14 = vcmask 195712   ;;  %vm93_vm15 = vcmask 130112  }
   0xe   :  { %43 = vrot.lane.b32.xlu0 %v109_v7, %s139_s30  ;;  %49 = vrot.lane.b32.xlu1 %v110_v8, %s140_s2 }
  0x12   :  { %55 = vrot.lane.b32.xlu0 %v111_v9, %s141_s7  ;;  %61 = vrot.lane.b32.xlu1 %v112_v10, %s142_s8 }
  0x16   :  { %67 = vrot.lane.b32.xlu0 %v113_v11, %s143_s13  ;;  %73 = vrot.lane.b32.xlu1 %v114_v12, %s144_s14 }
  0x1a   :  { %79 = vrot.lane.b32.xlu0 %v115_v13, %s145_s19  ;;  %85 = vrot.lane.b32.xlu1 %v116_v14, %s146_s20 }
  0x1e   :  { %91 = vrot.lane.b32.xlu0 %v117_v15, %s147_s0 }
  0x74   :  { %v8_v16 = vpop.permute.xlu0 %7   ;;  %v20_v17 = vpop.permute.xlu1 %19  }
  0x75   :  { %10 = vst.msk [vmem:[#allocation0] sm:$0x1] %vm9_vm1, %v8_v16  }
  0x78   :  { %v14_v18 = vpop.permute.xlu0 %13   ;;  %v26_v19 = vpop.permute.xlu1 %25  }
  0x79   :  { %16 = vst.msk [vmem:[#allocation0] sm:$0x1] %vm15_vm2, %v14_v18  }
  0x7a   :  { %22 = vst.msk [vmem:[#allocation0] sm:$0x1] %vm21_vm3, %v20_v17  }
  0x7b   :  { %28 = vst.msk [vmem:[#allocation0] sm:$0x1] %vm27_vm4, %v26_v19  }
  0x7c   :  { %v32_v20 = vpop.permute.xlu0 %31   ;;  %v38_v21 = vpop.permute.xlu1 %37  }
  0x7d   :  { %34 = vst.msk [vmem:[#allocation0] sm:$0x1] %vm33_vm5, %v32_v20  }
  0x7e   :  { %40 = vst.msk [vmem:[#allocation0] sm:$0x1] %vm39_vm6, %v38_v21  }
  0x80   :  { %v44_v22 = vpop.permute.xlu0 %43   ;;  %v50_v23 = vpop.permute.xlu1 %49  }
  0x81   :  { %46 = vst.msk [vmem:[#allocation0] sm:$0x1] %vm45_vm7, %v44_v22  }
  0x82   :  { %52 = vst.msk [vmem:[#allocation0] sm:$0x1] %vm51_vm8, %v50_v23  }
  0x84   :  { %v56_v24 = vpop.permute.xlu0 %55   ;;  %v62_v25 = vpop.permute.xlu1 %61  }
  0x85   :  { %58 = vst.msk [vmem:[#allocation0] sm:$0x1] %vm57_vm9, %v56_v24  }
  0x86   :  { %64 = vst.msk [vmem:[#allocation0] sm:$0x1] %vm63_vm10, %v62_v25  }
  0x88   :  { %v68_v26 = vpop.permute.xlu0 %67   ;;  %v74_v27 = vpop.permute.xlu1 %73  }
  0x89   :  { %70 = vst.msk [vmem:[#allocation0] sm:$0x1] %vm69_vm11, %v68_v26  }
  0x8a   :  { %76 = vst.msk [vmem:[#allocation0] sm:$0x1] %vm75_vm12, %v74_v27  }
  0x8c   :  { %v80_v28 = vpop.permute.xlu0 %79   ;;  %v86_v29 = vpop.permute.xlu1 %85  }
  0x8d   :  { %82 = vst.msk [vmem:[#allocation0] sm:$0x1] %vm81_vm13, %v80_v28  }
  0x8e   :  { %88 = vst.msk [vmem:[#allocation0] sm:$0x1] %vm87_vm14, %v86_v29  }
  0x90   :  { %v92_v30 = vpop.permute.xlu0 %91  }
  0x91   :  { %94 = vst.msk [vmem:[#allocation0] sm:$0x1] %vm93_vm15, %v92_v30  }
  0x98   :  { %v99_v31 = vld [vmem:[#allocation0] sm:$0x1] }
  0x99   :  { %102 = vst [vmem:[%s210_s1] sm:$0x1] %v99_v31 }

// kernel: basic_block.1
= control target key start
LH: loop header
LB: loop body
LE: loop exit
PB: predicated region body
PF: predicated region fallthrough
CT: control target
= control target key end

     0   :  { %s1103_s18 = smov 0   ;;  %s1331_s0 = inlined_call_operand.vmem [shape: f32[32,128], index: 0, kind: input, shape index: {}]   ;;  %s1332_s1 = inlined_call_operand.vmem [shape: bf16[128,384], index: 1, kind: input, shape index: {}]   ;;  %s1333_s2 = inlined_call_operand.vmem [shape: f32[1,128], index: 2, kind: input, shape index: {}]   ;;  %s1334_s3 = inlined_call_operand.vmem [shape: bf16[128,384], index: 3, kind: input, shape index: {}]   ;;  %s1335_s4 = inlined_call_operand.vmem [shape: f32[1,128], index: 4, kind: input, shape index: {}]   ;;  %s1336_s5 = inlined_call_operand.vmem [shape: f32[32,128], index: 5, kind: output, shape index: {}]  }
   0x1 LB: > { %s868_s19 = sadd.s32 4294967295, %s1068_s18   ;;  %p872_p0 = scmp.ge.s32.totalorder %s1068_s18, 1  ;;  %s1068_s18 = sphi %s1103_s18, %s15_s18  }
   0x2   : > { %p188_p1 = scmp.lt.s32.totalorder %s1068_s18, 3 }
   0x4   : > { %p189_p2 = pnand %p872_p0, %p188_p1 }
   0x5   : > { %s873_s11 = sshll.u32 (!%p189_p2), %s868_s19, 1 }
   0x6   : > { %192 = sbr.rel (%p189_p2) target bundleno = 468 (0x1d4), region = 40  ;;  %p217_p3 = scmp.lt.s32.totalorder (!%p189_p2), %s873_s11, 3 }
   0xb   : > { %v998_v0 = vld [vmem:[%s1332_s1 + $0xac] ss:$12 sps:$4 sm:$0xff]   ;;  %v1070_v1 = vmov 0.0   ;;  %v1000_v2 = vld [vmem:[%s1332_s1 + $0xb0] ss:$12 sps:$4 sm:$0xff]   ;;  %vm1071_vm0 = vmmov 0   ;;  %v231_v53 = vlaneseq }
   0xc   : > { %947 = vmatprep.subr.bf16.mxu1 %v1070_v1  ;;  %963 = vmatprep.mubr.msk.bf16.mxu1 %vm1071_vm0, %v1070_v1  ;;  %v1001_v3 = vld [vmem:[%s1332_s1 + $0xa8] ss:$12 sps:$4 sm:$0xff]   ;;  %v1072_v5 = vmov 0   ;;  %v1004_v6 = vld [vmem:[%s1332_s1 + $0x98] ss:$12 sps:$4 sm:$0xff]   ;;  %s1342_s11 = smov (!%p217_p3, %s873_s11), 3 }
   0xd   : > { %423 = vmatprep.subr.bf16.mxu0 %v998_v0  ;;  %948 = vmatpush3.bf16.msra.mxu1 %v1000_v2  ;;  %v1002_v4 = vld [vmem:[%s1332_s1 + $0x94] ss:$12 sps:$4 sm:$0xff]   ;;  %v1005_v7 = vld [vmem:[%s1332_s1 + $0x90] ss:$12 sps:$4 sm:$0xff]   ;;  %v1009_v10 = vld [vmem:[%s1332_s1 + $0x78] ss:$12 sps:$4 sm:$0xff]  }
   0xe   : > { %455 = vmatprep.mubr.bf16.mxu0 %v1072_v5  ;;  %424 = vmatpush1.bf16.msra.mxu0 %v1001_v3  ;;  %v1006_v8 = vld [vmem:[%s1332_s1 + $0x7c] ss:$12 sps:$4 sm:$0xff]   ;;  %v1008_v9 = vld [vmem:[%s1332_s1 + $0x80] ss:$12 sps:$4 sm:$0xff]   ;;  %v1010_v11 = vld [vmem:[%s1332_s1 + $0x64] ss:$12 sps:$4 sm:$0xff]  }
   0xf   : > { %949 = vmatprep.subr.bf16.mxu1 %v1070_v1  ;;  %425 = vmatprep.subr.bf16.mxu0 %v1002_v4  ;;  %v1012_v12 = vld [vmem:[%s1332_s1 + $0x68] ss:$12 sps:$4 sm:$0xff]   ;;  %v1013_v13 = vld [vmem:[%s1332_s1 + $0x60] ss:$12 sps:$4 sm:$0xff]   ;;  %v1016_v15 = vld [vmem:[%s1332_s1 + $0x50] ss:$12 sps:$4 sm:$0xff]  }
  0x10   : > { %v1014_v14 = vld [vmem:[%s1332_s1 + $0x4c] ss:$12 sps:$4 sm:$0xff]   ;;  %v1017_v16 = vld [vmem:[%s1332_s1 + $0x48] ss:$12 sps:$4 sm:$0xff]   ;;  %s874_s6 = sshll.u32 %s1342_s11, 3  ;;  %v232_v54 = vshrl.u32 %v231_v53, 7 }
  0x11   : > { %950 = vmatpush3.bf16.msra.mxu1 %v1004_v6  ;;  %v1018_v17 = vld [vmem:[%s1332_s1 + $0x34] ss:$12 sps:$4 sm:$0xff]   ;;  %v1020_v18 = vld [vmem:[%s1332_s1 + $0x38] ss:$12 sps:$4 sm:$0xff]   ;;  %v1021_v19 = vld [vmem:[%s1332_s1 + $0x30] ss:$12 sps:$4 sm:$0xff]   ;;  %s220_s16 = scalar_lea.vmem %s1331_s0, %s874_s6  ;;  %s226_s13 = scalar_lea.vmem %s1336_s5, %s874_s6 }
  0x12   : > { %426 = vmatpush1.bf16.msra.mxu0 %v1005_v7  ;;  %951 = vmatprep.subr.bf16.mxu1 %v1070_v1  ;;  %v1022_v20 = vld [vmem:[%s1332_s1 + $0x1c] ss:$12 sps:$4 sm:$0xff]   ;;  %v1024_v21 = vld [vmem:[%s1332_s1 + $0x20] ss:$12 sps:$4 sm:$0xff]   ;;  %v1025_v22 = vld [vmem:[%s1332_s1 + $0x18] ss:$12 sps:$4 sm:$0xff]  }
  0x13   : > { %427 = vmatprep.subr.bf16.mxu0 %v1006_v8  ;;  %v1026_v23 = vld [vmem:[%s1332_s1 + $0x4] ss:$12 sps:$4 sm:$0xff]   ;;  %v1028_v24 = vld [vmem:[%s1332_s1 + $0x8] ss:$12 sps:$4 sm:$0xff]   ;;  %v1029_v26 = vld [vmem:[%s1332_s1] ss:$12 sps:$4 sm:$0xff]  }
  0x14   : > { %v1198_v25 = vld [vmem:[%s220_s16] sm:$0xff]  ;;  %v1203_v27 = vld [vmem:[%s220_s16 + $0x8] sm:$0xff]  ;;  %v1033_v29 = vld [vmem:[%s1334_s3 + $0xb0] ss:$12 sps:$4 sm:$0xff]   ;;  %v233_v55 = vadd.s32 8, %v232_v54  ;;  %v238_v59 = vand.u32 15, %v232_v54 }
  0x15   : > { %952 = vmatpush3.bf16.msra.mxu1 %v1008_v9  ;;  %v1032_v28 = vld [vmem:[%s1334_s3 + $0xac] ss:$12 sps:$4 sm:$0xff]   ;;  %v262_v30 = vpack.c.bf16 %v1203_v27, %v1198_v25  ;;  %v1030_v31 = vld [vmem:[%s1334_s3 + $0xa8] ss:$12 sps:$4 sm:$0xff]   ;;  %v1034_v34 = vld [vmem:[%s1334_s3 + $0x90] ss:$12 sps:$4 sm:$0xff]  }
  0x16   : > { %428 = vmatpush1.bf16.msra.mxu0 %v1009_v10  ;;  %953 = vmatprep.subr.bf16.mxu1 %v1070_v1  ;;  %v1036_v32 = vld [vmem:[%s1334_s3 + $0x94] ss:$12 sps:$4 sm:$0xff]   ;;  %v1037_v33 = vld [vmem:[%s1334_s3 + $0x98] ss:$12 sps:$4 sm:$0xff]   ;;  %v1040_v35 = vld [vmem:[%s1334_s3 + $0x7c] ss:$12 sps:$4 sm:$0xff]  }
  0x17   : > { %429 = vmatprep.subr.bf16.mxu0 %v1010_v11  ;;  %v1041_v36 = vld [vmem:[%s1334_s3 + $0x80] ss:$12 sps:$4 sm:$0xff]   ;;  %v1038_v37 = vld [vmem:[%s1334_s3 + $0x78] ss:$12 sps:$4 sm:$0xff]   ;;  %v1045_v40 = vld [vmem:[%s1334_s3 + $0x68] ss:$12 sps:$4 sm:$0xff]  }
  0x18   : > { %v1044_v38 = vld [vmem:[%s1334_s3 + $0x64] ss:$12 sps:$4 sm:$0xff]   ;;  %v1042_v39 = vld [vmem:[%s1334_s3 + $0x60] ss:$12 sps:$4 sm:$0xff]   ;;  %v1046_v42 = vld [vmem:[%s1334_s3 + $0x48] ss:$12 sps:$4 sm:$0xff]  }
  0x19   : > { %954 = vmatpush3.bf16.msra.mxu1 %v1012_v12  ;;  %v1048_v41 = vld [vmem:[%s1334_s3 + $0x4c] ss:$12 sps:$4 sm:$0xff]   ;;  %v1049_v43 = vld [vmem:[%s1334_s3 + $0x50] ss:$12 sps:$4 sm:$0xff]   ;;  %v1052_v44 = vld [vmem:[%s1334_s3 + $0x34] ss:$12 sps:$4 sm:$0xff]  }
  0x1a   : > { %430 = vmatpush1.bf16.msra.mxu0 %v1013_v13  ;;  %955 = vmatprep.subr.bf16.mxu1 %v1070_v1  ;;  %v1050_v45 = vld [vmem:[%s1334_s3 + $0x30] ss:$12 sps:$4 sm:$0xff]   ;;  %v1053_v46 = vld [vmem:[%s1334_s3 + $0x38] ss:$12 sps:$4 sm:$0xff]   ;;  %v1057_v49 = vld [vmem:[%s1334_s3 + $0x20] ss:$12 sps:$4 sm:$0xff]  }
  0x1b   : > { %431 = vmatprep.subr.bf16.mxu0 %v1014_v14  ;;  %v1056_v47 = vld [vmem:[%s1334_s3 + $0x1c] ss:$12 sps:$4 sm:$0xff]   ;;  %v1054_v48 = vld [vmem:[%s1334_s3 + $0x18] ss:$12 sps:$4 sm:$0xff]   ;;  %v1058_v51 = vld [vmem:[%s1334_s3] ss:$12 sps:$4 sm:$0xff]  }
  0x1c   : > { %v1060_v50 = vld [vmem:[%s1334_s3 + $0x4] ss:$12 sps:$4 sm:$0xff]   ;;  %v1061_v52 = vld [vmem:[%s1334_s3 + $0x8] ss:$12 sps:$4 sm:$0xff]   ;;  %v245_v62 = vand.u32 15, %v233_v55  ;;  %vm514_vm1 = vcmp.lt.s32.totalorder %v232_v54, 7 }
  0x1d   : > { %956 = vmatpush3.bf16.msra.mxu1 %v1016_v15  ;;  %vm509_vm2 = vcmp.lt.s32.totalorder %v232_v54, 1  ;;  %vm1291_vm3 = vcmp.ne.s32.totalorder %v238_v59, 0  ;;  %v901_v15 = vld [vmem:[%s1333_s2] ss:$0 sm:$0xff] }
  0x1e   : > { %432 = vmatpush1.bf16.msra.mxu0 %v1017_v16  ;;  %957 = vmatprep.subr.bf16.mxu1 %v1070_v1  ;;  %vm1295_vm4 = vcmp.ne.s32.totalorder %v245_v62, 15 }
  0x1f   : > { %433 = vmatprep.subr.bf16.mxu0 %v1018_v17 }
  0x21   : > { %958 = vmatpush3.bf16.msra.mxu1 %v1020_v18 }
  0x22   : > { %434 = vmatpush1.bf16.msra.mxu0 %v1021_v19  ;;  %959 = vmatprep.subr.bf16.mxu1 %v1070_v1 }
  0x23   : > { %435 = vmatprep.subr.bf16.mxu0 %v1022_v20 }
  0x25   : > { %960 = vmatpush3.bf16.msra.mxu1 %v1024_v21 }
  0x26   : > { %436 = vmatpush1.bf16.msra.mxu0 %v1025_v22  ;;  %961 = vmatprep.subr.bf16.mxu1 %v1070_v1 }
  0x27   : > { %437 = vmatprep.subr.bf16.mxu0 %v1026_v23 }
  0x29   : > { %962 = vmatpush3.bf16.msra.mxu1 %v1028_v24 }
  0x2a   : > { %438 = vmatpush1.bf16.msra.mxu0 %v1029_v26  ;;  %967 = vmatprep.subr.bf16.mxu1 %v1070_v1 }
  0x2b   : > { %697 = vmatprep.subr.bf16.mxu0 %v1032_v28 }
  0x2c   : > { %964 = vmatmul.mubr.bf16.vlgmr.msra.gmra.mxu1 %v262_v30 }
  0x2d   : > { %456 = vmatmul.mubr.bf16.vlgmr.msra.gmra.mxu0 %v262_v30  ;;  %968 = vmatpush3.bf16.msra.mxu1 %v1033_v29 }
  0x2e   : > { %698 = vmatpush1.bf16.msra.mxu0 %v1030_v31  ;;  %969 = vmatprep.subr.bf16.mxu1 %v1070_v1 }
  0x2f   : > { %699 = vmatprep.subr.bf16.mxu0 %v1036_v32  ;;  %729 = vmatprep.mubr.bf16.mxu0 %v1072_v5 }
  0x30   : > { %983 = vmatprep.mubr.msk.bf16.mxu1 %vm1071_vm0, %v1070_v1 }
  0x31   : > { %970 = vmatpush3.bf16.msra.mxu1 %v1037_v33 }
  0x32   : > { %700 = vmatpush1.bf16.msra.mxu0 %v1034_v34  ;;  %971 = vmatprep.subr.bf16.mxu1 %v1070_v1 }
  0x33   : > { %701 = vmatprep.subr.bf16.mxu0 %v1040_v35 }
  0x35   : > { %972 = vmatpush3.bf16.msra.mxu1 %v1041_v36 }
  0x36   : > { %702 = vmatpush1.bf16.msra.mxu0 %v1038_v37  ;;  %973 = vmatprep.subr.bf16.mxu1 %v1070_v1 }
  0x37   : > { %703 = vmatprep.subr.bf16.mxu0 %v1044_v38 }
  0x39   : > { %974 = vmatpush3.bf16.msra.mxu1 %v1045_v40 }
  0x3a   : > { %704 = vmatpush1.bf16.msra.mxu0 %v1042_v39  ;;  %975 = vmatprep.subr.bf16.mxu1 %v1070_v1 }
  0x3b   : > { %705 = vmatprep.subr.bf16.mxu0 %v1048_v41 }
  0x3d   : > { %976 = vmatpush3.bf16.msra.mxu1 %v1049_v43 }
  0x3e   : > { %706 = vmatpush1.bf16.msra.mxu0 %v1046_v42  ;;  %977 = vmatprep.subr.bf16.mxu1 %v1070_v1 }
  0x3f   : > { %707 = vmatprep.subr.bf16.mxu0 %v1052_v44 }
  0x41   : > { %978 = vmatpush3.bf16.msra.mxu1 %v1053_v46 }
  0x42   : > { %708 = vmatpush1.bf16.msra.mxu0 %v1050_v45  ;;  %979 = vmatprep.subr.bf16.mxu1 %v1070_v1  ;;  %v926_v45 = vld [vmem:[%s1335_s4] ss:$0 sm:$0xff] }
  0x43   : > { %709 = vmatprep.subr.bf16.mxu0 %v1056_v47 }
  0x45   : > { %980 = vmatpush3.bf16.msra.mxu1 %v1057_v49 }
  0x46   : > { %710 = vmatpush1.bf16.msra.mxu0 %v1054_v48  ;;  %981 = vmatprep.subr.bf16.mxu1 %v1070_v1 }
  0x47   : > { %711 = vmatprep.subr.bf16.mxu0 %v1060_v50 }
  0x49   : > { %982 = vmatpush3.bf16.msra.mxu1 %v1061_v52 }
  0x4a   : > { %712 = vmatpush1.bf16.msra.mxu0 %v1058_v51 }
  0xec   : > { %v500_v56 = vpop.f32.mrf.mxu1 }
  0xed   : > { %v457_v57 = vpop.f32.mrf.mxu0  ;;  %v512_v60 = vrot.slane %v500_v56, 1 }
  0xee   : > { %v965_v58 = vpop.f32.mrf.mxu1  ;;  %v507_v2 = vrot.slane %v457_v57, 7 }
  0xef   : > { %v459_v61 = vpop.f32.mrf.mxu0 }
  0xf0   : > { %v503_v63 = vpop.f32.mrf.mxu1 }
  0xf1   : > { %v513_v0 = vrot.slane %v503_v63, 1  ;;  %v461_v1 = vpop.f32.mrf.mxu0 }
  0xf2   : > { %v508_v4 = vrot.slane %v461_v1, 7  ;;  %v966_v5 = vpop.f32.mrf.mxu1 }
  0xf3   : > { %v463_v7 = vpop.f32.mrf.mxu0  ;;  %v516_v8 = vsel %vm514_vm1, %v513_v0, %v512_v60  ;;  %v515_v16 = vsel %vm514_vm1, %v512_v60, %v513_v0 }
  0xf4   : > { %v511_v9 = vsel %vm509_vm2, %v508_v4, %v507_v2  ;;  %v510_v10 = vsel %vm509_vm2, %v507_v2, %v508_v4  ;;  %v522_v14 = vsel %vm1295_vm4, %v516_v8, 0.0 }
  0xf5   : > { %v517_v11 = vsel %vm1291_vm3, %v511_v9, 0.0  ;;  %v520_v12 = vadd.f32 %v510_v10, %v463_v7 }
  0xf6   : > { %v519_v13 = vadd.f32 %v517_v11, %v459_v61 }
  0xf7   : > { %v524_v17 = vadd.f32 %v522_v14, %v520_v12 }
  0xf8   : > { %v523_v18 = vadd.f32 %v519_v13, %v515_v16 }
  0xf9   : > { %v533_v19 = vadd.f32 %v901_v15, %v524_v17 }
  0xfa   : > { %v532_v20 = vadd.f32 %v901_v15, %v523_v18 }
  0xfb   : > { %v535_v21 = vmax.f32 %v533_v19, 0.0 }
  0xfc   : > { %v534_v22 = vmax.f32 %v532_v20, 0.0 }
  0xfe   : > { %v536_v23 = vpack.c.bf16 %v535_v21, %v534_v22 }
 0x100   : > { %730 = vmatmul.mubr.bf16.vlgmr.msra.gmra.mxu0 %v536_v23  ;;  %984 = vmatmul.mubr.bf16.vlgmr.msra.gmra.mxu1 %v536_v23 }
 0x1c0   : > { %v731_v24 = vpop.f32.mrf.mxu0  ;;  %v774_v26 = vpop.f32.mrf.mxu1 }
 0x1c1   : > { %v781_v32 = vrot.slane %v731_v24, 7  ;;  %v785_v33 = vrot.slane %v774_v26, 1 }
 0x1c2   : > { %v733_v28 = vpop.f32.mrf.mxu0  ;;  %v985_v29 = vpop.f32.mrf.mxu1 }
 0x1c4   : > { %v735_v30 = vpop.f32.mrf.mxu0  ;;  %v777_v31 = vpop.f32.mrf.mxu1 }
 0x1c5   : > { %v782_v34 = vrot.slane %v735_v30, 7  ;;  %v786_v35 = vrot.slane %v777_v31, 1 }
 0x1c6   : > { %v737_v36 = vpop.f32.mrf.mxu0  ;;  %v986_v37 = vpop.f32.mrf.mxu1 }
 0x1c7   : > { %v784_v38 = vsel %vm509_vm2, %v782_v34, %v781_v32  ;;  %v783_v39 = vsel %vm509_vm2, %v781_v32, %v782_v34  ;;  %v788_v40 = vsel %vm514_vm1, %v786_v35, %v785_v33  ;;  %v787_v46 = vsel %vm514_vm1, %v785_v33, %v786_v35 }
 0x1c8   : > { %v789_v41 = vsel %vm1291_vm3, %v784_v38, 0.0  ;;  %v792_v42 = vadd.f32 %v783_v39, %v737_v36  ;;  %v794_v43 = vsel %vm1295_vm4, %v788_v40, 0.0 }
 0x1c9   : > { %v791_v44 = vadd.f32 %v789_v41, %v733_v28 }
 0x1ca   : > { %v796_v47 = vadd.f32 %v794_v43, %v792_v42 }
 0x1cb   : > { %v795_v48 = vadd.f32 %v791_v44, %v787_v46 }
 0x1cc   : > { %v805_v49 = vadd.f32 %v926_v45, %v796_v47 }
 0x1cd   : > { %v804_v50 = vadd.f32 %v926_v45, %v795_v48 }
 0x1ce   : > { %v807_v51 = vadd.f32 %v805_v49, %v1203_v27 }
 0x1cf   : > { %v806_v52 = vadd.f32 %v804_v50, %v1198_v25 }
 0x1d0   : > { %v809_v55 = vmax.f32 %v807_v51, 0.0 }
 0x1d1   : > { %v808_v53 = vmax.f32 %v806_v52, 0.0 }
 0x1d2   : > { %811 = vst [vmem:[%s226_s13 + $0x8] sm:$0xff] %v809_v55 }
 0x1d3   : > { %810 = vst [vmem:[%s226_s13] sm:$0xff] %v808_v53 }
 0x1d4 PF: > { %s15_s18 = sadd.s32 1, %s1068_s18  }
 0x1d5   : > { %p12_p4 = scmp.ge.s32.totalorder %s15_s18, 4  }
 0x1d7   :  { %14 = sbr.rel (!%p12_p4) target bundleno = 1 (0x1), region = 70 }

</bundles_post_ra>
